<compile_context>
chip_gen: v6e
topology: v6e:2x2x1
jax: 0.10.0
libtpu: 0.0.40
codegen_flags: <defaults>
</compile_context>

<pallas_src>
import jax
import jax.numpy as jnp
from jax.experimental import pallas as pl
from jax.experimental.pallas import tpu as pltpu

EPS = 1e-5  # PyTorch LayerNorm default


def _layer_norm_cf(h, gamma_col, beta_col):
    """LayerNorm over the channel (sublane) axis of a (H, T) activation."""
    mean = jnp.mean(h, axis=0, keepdims=True)
    var = jnp.mean((h - mean) ** 2, axis=0, keepdims=True)
    return (h - mean) * jax.lax.rsqrt(var + EPS) * gamma_col + beta_col


def variance_predictor_kernel(xpad_ref, w1_ref, w2_ref, p_ref, o_ref, hpad_ref):
    # xpad_ref: (1, C, T + K - 1)   input, channels-first, pre-padded along T
    # w1_ref:   (H, K*C)            conv1 weights, taps folded into contraction
    # w2_ref:   (H, K*H)            conv2 weights, taps folded into contraction
    # p_ref:    (H, 8)              packed columns [b1,g1,be1,b2,g2,be2,wp,bp]
    # o_ref:    (1, 1, T)           lane-dense output block
    # hpad_ref: (H, T + 2)          VMEM scratch: conv2 halo buffer
    T = o_ref.shape[2]
    C = xpad_ref.shape[1]
    H, KC = w1_ref.shape
    K = KC // C
    PAD2 = 1  # the module hardcodes padding=1 for conv2 (K == 3 asserted)

    xpad = xpad_ref[0]                                   # (C, T + K - 1)

    b1 = p_ref[:, 0:1]
    g1 = p_ref[:, 1:2]
    be1 = p_ref[:, 2:3]
    b2 = p_ref[:, 3:4]
    g2 = p_ref[:, 4:5]
    be2 = p_ref[:, 5:6]
    wp = p_ref[:, 6:7]
    bp = p_ref[0, 7]

    # ---- conv1: K taps folded into one (H, K*C) @ (K*C, T) MXU matmul + ReLU
    taps1 = jnp.concatenate([xpad[:, k:k + T] for k in range(K)], axis=0)  # (K*C, T)
    h = jnp.dot(w1_ref[...], taps1, preferred_element_type=jnp.float32)    # (H, T)
    h = jnp.maximum(h + b1, 0.0)

    # ---- ln1 (dropout is identity at inference)
    h = _layer_norm_cf(h, g1, be1)

    # ---- conv2 (padding=1): halo via zeroed VMEM scratch, single matmul + ReLU
    hpad_ref[...] = jnp.zeros_like(hpad_ref)
    hpad_ref[:, PAD2:PAD2 + T] = h
    hpad = hpad_ref[...]                                                   # (H, T + 2)
    taps2 = jnp.concatenate([hpad[:, k:k + T] for k in range(K)], axis=0)  # (K*H, T)
    h2 = jnp.dot(w2_ref[...], taps2, preferred_element_type=jnp.float32)   # (H, T)
    h2 = jnp.maximum(h2 + b2, 0.0)

    # ---- ln2
    h2 = _layer_norm_cf(h2, g2, be2)

    # ---- proj Linear(H, 1): VPU multiply + cross-sublane reduce (no MXU trip)
    out = jnp.sum(h2 * wp, axis=0, keepdims=True) + bp                     # (1, T)
    o_ref[0] = out


def variance_predictor(x, params):
    """x: (B, T, C_in) float32 -> (B, T) float32."""
    B, T, C = x.shape
    w1 = params["w1"]                      # (K, C, H)
    K, _, H = w1.shape
    # The PyTorch module hardcodes padding=1 for conv2; output length only
    # matches the input length when var_pred_kernel_size == 3.
    assert K == 3, "VariancePredictor semantics only length-consistent for K=3"
    pad1 = (K - 1) // 2
    PAD2 = 1

    # Layout plumbing (wrapper-side, cheap): channels-first + pre-pad along T.
    x_cf = jnp.transpose(x, (0, 2, 1))                       # (B, C, T)
    x_pad = jnp.pad(x_cf, ((0, 0), (0, 0), (pad1, pad1)))    # (B, C, T + K - 1)

    # Fold the K taps into the contraction dim:  W[h, k*C + c] = w[k, c, h]
    w1_mat = jnp.transpose(w1, (2, 0, 1)).reshape(H, K * C)
    w2_mat = jnp.transpose(params["w2"], (2, 0, 1)).reshape(H, K * H)

    # Pack all per-channel vectors into one (H, 8) array (one DMA, one buffer).
    bp_col = jnp.full((H,), params["bp"][0], jnp.float32)
    p_packed = jnp.stack(
        [params["b1"], params["g1"], params["be1"],
         params["b2"], params["g2"], params["be2"],
         params["wp"][:, 0], bp_col],
        axis=1,
    )                                                         # (H, 8)

    out = pl.pallas_call(
        variance_predictor_kernel,
        out_shape=jax.ShapeDtypeStruct((B, 1, T), jnp.float32),
        grid=(B,),
        in_specs=[
            pl.BlockSpec((1, C, T + 2 * pad1), lambda b: (b, 0, 0)),
            pl.BlockSpec((H, K * C), lambda b: (0, 0)),
            pl.BlockSpec((H, K * H), lambda b: (0, 0)),
            pl.BlockSpec((H, 8), lambda b: (0, 0)),
        ],
        out_specs=pl.BlockSpec((1, 1, T), lambda b: (b, 0, 0)),
        scratch_shapes=[pltpu.VMEM((H, T + 2 * PAD2), jnp.float32)],
        compiler_params=pltpu.CompilerParams(dimension_semantics=("parallel",)),
    )(x_pad, w1_mat, w2_mat, p_packed)

    return out[:, 0, :]


def reference(x, p):
    """Pure-JAX f32 reference matching the PyTorch forward semantics."""
    def conv1d(h, w, b, pad):
        K = w.shape[0]
        T = h.shape[1]
        hp = jnp.pad(h, ((0, 0), (pad, pad), (0, 0)))
        t_out = T + 2 * pad - (K - 1)
        y = sum(jnp.einsum("btc,ch->bth", hp[:, k:k + t_out], w[k]) for k in range(K))
        return y + b

    def ln(h, g, be):
        m = h.mean(-1, keepdims=True)
        v = ((h - m) ** 2).mean(-1, keepdims=True)
        return (h - m) / jnp.sqrt(v + EPS) * g + be

    h = jax.nn.relu(conv1d(x, p["w1"], p["b1"], (p["w1"].shape[0] - 1) // 2))
    h = ln(h, p["g1"], p["be1"])
    h = jax.nn.relu(conv1d(h, p["w2"], p["b2"], 1))
    h = ln(h, p["g2"], p["be2"])
    return (h @ p["wp"] + p["bp"])[..., 0]


if __name__ == "__main__":
    # Small shapes consistent with the module:
    # encoder_embed_dim=32, var_pred_hidden_dim=32, var_pred_kernel_size=3
    B, T, C_IN, H, K = 2, 16, 32, 32, 3

    key = jax.random.PRNGKey(0)
    ks = jax.random.split(key, 8)
    params = {
        # conv1: PyTorch weight (H, C_in, K) -> stored as (K, C_in, H)
        "w1": 0.1 * jax.random.normal(ks[0], (K, C_IN, H), jnp.float32),
        "b1": 0.01 * jax.random.normal(ks[1], (H,), jnp.float32),
        "g1": jnp.ones((H,), jnp.float32),
        "be1": jnp.zeros((H,), jnp.float32),
        # conv2: (K, H, H)
        "w2": 0.1 * jax.random.normal(ks[2], (K, H, H), jnp.float32),
        "b2": 0.01 * jax.random.normal(ks[3], (H,), jnp.float32),
        "g2": jnp.ones((H,), jnp.float32),
        "be2": jnp.zeros((H,), jnp.float32),
        # proj: Linear(H, 1)
        "wp": 0.1 * jax.random.normal(ks[4], (H, 1), jnp.float32),
        "bp": 0.01 * jax.random.normal(ks[5], (1,), jnp.float32),
    }
    x = jax.random.normal(ks[6], (B, T, C_IN), jnp.float32)

    y = jax.block_until_ready(variance_predictor(x, params))
    y_ref = jax.block_until_ready(reference(x, params))

    assert y.shape == (B, T), y.shape
    assert jnp.allclose(y, y_ref, atol=1e-4, rtol=1e-4), (
        "mismatch vs reference", float(jnp.max(jnp.abs(y - y_ref))))

    print("KERNEL_OK")
</pallas_src>

<mosaic_0001>
module attributes {stable_mosaic.version = 11 : i64} {
  func.func @variance_predictor_kernel(%arg0: i32, %arg1: memref<1x32x18xf32, #tpu.memory_space<vmem>>, %arg2: memref<32x96xf32, #tpu.memory_space<vmem>>, %arg3: memref<32x96xf32, #tpu.memory_space<vmem>>, %arg4: memref<32x8xf32, #tpu.memory_space<vmem>>, %arg5: memref<1x1x16xf32, #tpu.memory_space<vmem>>, %arg6: memref<32x18xf32, #tpu.memory_space<vmem>>) attributes {dimension_semantics = [#tpu.dimension_semantics<parallel>], iteration_bounds = array<i64: 2>, scalar_prefetch = 0 : i64, scratch_operands = 1 : i64, tpu.core_type = #tpu.core_type<tc>, window_params = [{transform_indices = @transform_0, window_bounds = array<i64: 1, 32, 18>}, {pipeline_mode = #tpu.pipeline_mode<synchronous>, transform_indices = @transform_1, window_bounds = array<i64: 32, 96>}, {pipeline_mode = #tpu.pipeline_mode<synchronous>, transform_indices = @transform_2, window_bounds = array<i64: 32, 96>}, {pipeline_mode = #tpu.pipeline_mode<synchronous>, transform_indices = @transform_3, window_bounds = array<i64: 32, 8>}, {transform_indices = @transform_4, window_bounds = array<i64: 1, 1, 16>}]} {
    %c0 = arith.constant 0 : index
    %c0_0 = arith.constant 0 : index
    %c0_1 = arith.constant 0 : index
    %0 = vector.load %arg1[%c0, %c0_0, %c0_1] : memref<1x32x18xf32, #tpu.memory_space<vmem>>, vector<1x32x18xf32>
    %1 = vector.shape_cast %0 : vector<1x32x18xf32> to vector<32x18xf32>
    %c0_2 = arith.constant 0 : index
    %c0_3 = arith.constant 0 : index
    %2 = vector.load %arg4[%c0_2, %c0_3] : memref<32x8xf32, #tpu.memory_space<vmem>>, vector<32x1xf32>
    %c0_4 = arith.constant 0 : index
    %c1 = arith.constant 1 : index
    %3 = vector.load %arg4[%c0_4, %c1] : memref<32x8xf32, #tpu.memory_space<vmem>>, vector<32x1xf32>
    %c0_5 = arith.constant 0 : index
    %c2 = arith.constant 2 : index
    %4 = vector.load %arg4[%c0_5, %c2] : memref<32x8xf32, #tpu.memory_space<vmem>>, vector<32x1xf32>
    %c0_6 = arith.constant 0 : index
    %c3 = arith.constant 3 : index
    %5 = vector.load %arg4[%c0_6, %c3] : memref<32x8xf32, #tpu.memory_space<vmem>>, vector<32x1xf32>
    %c0_7 = arith.constant 0 : index
    %c4 = arith.constant 4 : index
    %6 = vector.load %arg4[%c0_7, %c4] : memref<32x8xf32, #tpu.memory_space<vmem>>, vector<32x1xf32>
    %c0_8 = arith.constant 0 : index
    %c5 = arith.constant 5 : index
    %7 = vector.load %arg4[%c0_8, %c5] : memref<32x8xf32, #tpu.memory_space<vmem>>, vector<32x1xf32>
    %c0_9 = arith.constant 0 : index
    %c6 = arith.constant 6 : index
    %8 = vector.load %arg4[%c0_9, %c6] : memref<32x8xf32, #tpu.memory_space<vmem>>, vector<32x1xf32>
    %c0_10 = arith.constant 0 : index
    %c7 = arith.constant 7 : index
    %9 = vector.load %arg4[%c0_10, %c7] : memref<32x8xf32, #tpu.memory_space<vmem>>, vector<1x1xf32>
    %10 = vector.extract %9[0, 0] : f32 from vector<1x1xf32>
    %11 = vector.extract_strided_slice %1 {offsets = [0, 0], sizes = [32, 16], strides = [1, 1]} : vector<32x18xf32> to vector<32x16xf32>
    %12 = vector.extract_strided_slice %1 {offsets = [0, 1], sizes = [32, 16], strides = [1, 1]} : vector<32x18xf32> to vector<32x16xf32>
    %13 = vector.extract_strided_slice %1 {offsets = [0, 2], sizes = [32, 16], strides = [1, 1]} : vector<32x18xf32> to vector<32x16xf32>
    %14 = tpu.concatenate %11, %12, %13 in 0 : vector<32x16xf32>, vector<32x16xf32>, vector<32x16xf32> -> vector<96x16xf32>
    %c0_11 = arith.constant 0 : index
    %c0_12 = arith.constant 0 : index
    %15 = vector.load %arg2[%c0_11, %c0_12] : memref<32x96xf32, #tpu.memory_space<vmem>>, vector<32x96xf32>
    %cst = arith.constant dense<0.000000e+00> : vector<32x16xf32>
    %16 = tpu.matmul %15, %14, %cst {dimension_numbers = #tpu.dot_dimension_numbers<[1], [0], [0], [1], [0, 0, 1, 1], [], []>} : vector<32x96xf32>, vector<96x16xf32>, vector<32x16xf32> -> vector<32x16xf32>
    %17 = vector.broadcast %2 : vector<32x1xf32> to vector<32x16xf32>
    %18 = arith.addf %16, %17 : vector<32x16xf32>
    %cst_13 = arith.constant 0.000000e+00 : f32
    %19 = vector.broadcast %cst_13 : f32 to vector<32x16xf32>
    %20 = arith.maximumf %18, %19 : vector<32x16xf32>
    %cst_14 = arith.constant dense<0.000000e+00> : vector<16xf32>
    %21 = vector.multi_reduction <add>, %20, %cst_14 [0] : vector<32x16xf32> to vector<16xf32>
    %22 = vector.shape_cast %21 : vector<16xf32> to vector<1x16xf32>
    %cst_15 = arith.constant 3.200000e+01 : f32
    %23 = vector.broadcast %cst_15 : f32 to vector<1x16xf32>
    %24 = arith.divf %22, %23 : vector<1x16xf32>
    %25 = vector.broadcast %24 : vector<1x16xf32> to vector<32x16xf32>
    %26 = arith.subf %20, %25 : vector<32x16xf32>
    %27 = arith.mulf %26, %26 : vector<32x16xf32>
    %cst_16 = arith.constant dense<0.000000e+00> : vector<16xf32>
    %28 = vector.multi_reduction <add>, %27, %cst_16 [0] : vector<32x16xf32> to vector<16xf32>
    %29 = vector.shape_cast %28 : vector<16xf32> to vector<1x16xf32>
    %cst_17 = arith.constant 3.200000e+01 : f32
    %30 = vector.broadcast %cst_17 : f32 to vector<1x16xf32>
    %31 = arith.divf %29, %30 : vector<1x16xf32>
    %32 = vector.broadcast %24 : vector<1x16xf32> to vector<32x16xf32>
    %33 = arith.subf %20, %32 : vector<32x16xf32>
    %cst_18 = arith.constant 9.99999974E-6 : f32
    %34 = vector.broadcast %cst_18 : f32 to vector<1x16xf32>
    %35 = arith.addf %31, %34 : vector<1x16xf32>
    %36 = math.rsqrt %35 : vector<1x16xf32>
    %37 = vector.broadcast %36 : vector<1x16xf32> to vector<32x16xf32>
    %38 = arith.mulf %33, %37 : vector<32x16xf32>
    %39 = vector.broadcast %3 : vector<32x1xf32> to vector<32x16xf32>
    %40 = arith.mulf %38, %39 : vector<32x16xf32>
    %41 = vector.broadcast %4 : vector<32x1xf32> to vector<32x16xf32>
    %42 = arith.addf %40, %41 : vector<32x16xf32>
    %cst_19 = arith.constant 0.000000e+00 : f32
    %43 = vector.broadcast %cst_19 : f32 to vector<32x18xf32>
    %c0_20 = arith.constant 0 : index
    %c0_21 = arith.constant 0 : index
    %44 = vector.load %arg6[%c0_20, %c0_21] : memref<32x18xf32, #tpu.memory_space<vmem>>, vector<32x18xf32>
    tpu.vector_store %arg6[%c0_20, %c0_21], %43 {strides = array<i32>} : memref<32x18xf32, #tpu.memory_space<vmem>>, vector<32x18xf32>,
    %c0_22 = arith.constant 0 : index
    %c1_23 = arith.constant 1 : index
    %45 = vector.load %arg6[%c0_22, %c1_23] : memref<32x18xf32, #tpu.memory_space<vmem>>, vector<32x16xf32>
    tpu.vector_store %arg6[%c0_22, %c1_23], %42 {strides = array<i32>} : memref<32x18xf32, #tpu.memory_space<vmem>>, vector<32x16xf32>,
    %c0_24 = arith.constant 0 : index
    %c0_25 = arith.constant 0 : index
    %46 = vector.load %arg6[%c0_24, %c0_25] : memref<32x18xf32, #tpu.memory_space<vmem>>, vector<32x18xf32>
    %47 = vector.extract_strided_slice %46 {offsets = [0, 0], sizes = [32, 16], strides = [1, 1]} : vector<32x18xf32> to vector<32x16xf32>
    %48 = vector.extract_strided_slice %46 {offsets = [0, 1], sizes = [32, 16], strides = [1, 1]} : vector<32x18xf32> to vector<32x16xf32>
    %49 = vector.extract_strided_slice %46 {offsets = [0, 2], sizes = [32, 16], strides = [1, 1]} : vector<32x18xf32> to vector<32x16xf32>
    %50 = tpu.concatenate %47, %48, %49 in 0 : vector<32x16xf32>, vector<32x16xf32>, vector<32x16xf32> -> vector<96x16xf32>
    %c0_26 = arith.constant 0 : index
    %c0_27 = arith.constant 0 : index
    %51 = vector.load %arg3[%c0_26, %c0_27] : memref<32x96xf32, #tpu.memory_space<vmem>>, vector<32x96xf32>
    %cst_28 = arith.constant dense<0.000000e+00> : vector<32x16xf32>
    %52 = tpu.matmul %51, %50, %cst_28 {dimension_numbers = #tpu.dot_dimension_numbers<[1], [0], [0], [1], [0, 0, 1, 1], [], []>} : vector<32x96xf32>, vector<96x16xf32>, vector<32x16xf32> -> vector<32x16xf32>
    %53 = vector.broadcast %5 : vector<32x1xf32> to vector<32x16xf32>
    %54 = arith.addf %52, %53 : vector<32x16xf32>
    %cst_29 = arith.constant 0.000000e+00 : f32
    %55 = vector.broadcast %cst_29 : f32 to vector<32x16xf32>
    %56 = arith.maximumf %54, %55 : vector<32x16xf32>
    %cst_30 = arith.constant dense<0.000000e+00> : vector<16xf32>
    %57 = vector.multi_reduction <add>, %56, %cst_30 [0] : vector<32x16xf32> to vector<16xf32>
    %58 = vector.shape_cast %57 : vector<16xf32> to vector<1x16xf32>
    %cst_31 = arith.constant 3.200000e+01 : f32
    %59 = vector.broadcast %cst_31 : f32 to vector<1x16xf32>
    %60 = arith.divf %58, %59 : vector<1x16xf32>
    %61 = vector.broadcast %60 : vector<1x16xf32> to vector<32x16xf32>
    %62 = arith.subf %56, %61 : vector<32x16xf32>
    %63 = arith.mulf %62, %62 : vector<32x16xf32>
    %cst_32 = arith.constant dense<0.000000e+00> : vector<16xf32>
    %64 = vector.multi_reduction <add>, %63, %cst_32 [0] : vector<32x16xf32> to vector<16xf32>
    %65 = vector.shape_cast %64 : vector<16xf32> to vector<1x16xf32>
    %cst_33 = arith.constant 3.200000e+01 : f32
    %66 = vector.broadcast %cst_33 : f32 to vector<1x16xf32>
    %67 = arith.divf %65, %66 : vector<1x16xf32>
    %68 = vector.broadcast %60 : vector<1x16xf32> to vector<32x16xf32>
    %69 = arith.subf %56, %68 : vector<32x16xf32>
    %cst_34 = arith.constant 9.99999974E-6 : f32
    %70 = vector.broadcast %cst_34 : f32 to vector<1x16xf32>
    %71 = arith.addf %67, %70 : vector<1x16xf32>
    %72 = math.rsqrt %71 : vector<1x16xf32>
    %73 = vector.broadcast %72 : vector<1x16xf32> to vector<32x16xf32>
    %74 = arith.mulf %69, %73 : vector<32x16xf32>
    %75 = vector.broadcast %6 : vector<32x1xf32> to vector<32x16xf32>
    %76 = arith.mulf %74, %75 : vector<32x16xf32>
    %77 = vector.broadcast %7 : vector<32x1xf32> to vector<32x16xf32>
    %78 = arith.addf %76, %77 : vector<32x16xf32>
    %79 = vector.broadcast %8 : vector<32x1xf32> to vector<32x16xf32>
    %80 = arith.mulf %78, %79 : vector<32x16xf32>
    %cst_35 = arith.constant dense<0.000000e+00> : vector<16xf32>
    %81 = vector.multi_reduction <add>, %80, %cst_35 [0] : vector<32x16xf32> to vector<16xf32>
    %82 = vector.shape_cast %81 : vector<16xf32> to vector<1x16xf32>
    %83 = vector.broadcast %10 : f32 to vector<1x16xf32>
    %84 = arith.addf %82, %83 : vector<1x16xf32>
    %c0_36 = arith.constant 0 : index
    %c0_37 = arith.constant 0 : index
    %c0_38 = arith.constant 0 : index
    %85 = vector.load %arg5[%c0_36, %c0_37, %c0_38] : memref<1x1x16xf32, #tpu.memory_space<vmem>>, vector<1x1x16xf32>
    %86 = vector.shape_cast %85 : vector<1x1x16xf32> to vector<1x16xf32>
    %87 = vector.shape_cast %84 : vector<1x16xf32> to vector<1x1x16xf32>
    tpu.vector_store %arg5[%c0_36, %c0_37, %c0_38], %87 {strides = array<i32>} : memref<1x1x16xf32, #tpu.memory_space<vmem>>, vector<1x1x16xf32>,
    return
  }
  func.func @transform_0(%arg0: i32) -> (i32, i32, i32) {
    %c0_i32 = arith.constant 0 : i32
    %c0_i32_0 = arith.constant 0 : i32
    %c0_i32_1 = arith.constant 0 : i32
    return %arg0, %c0_i32, %c0_i32_0 : i32, i32, i32
  }
  func.func @transform_1(%arg0: i32) -> (i32, i32) {
    %c0_i32 = arith.constant 0 : i32
    %c0_i32_0 = arith.constant 0 : i32
    %c0_i32_1 = arith.constant 0 : i32
    return %c0_i32, %c0_i32_0 : i32, i32
  }
  func.func @transform_2(%arg0: i32) -> (i32, i32) {
    %c0_i32 = arith.constant 0 : i32
    %c0_i32_0 = arith.constant 0 : i32
    %c0_i32_1 = arith.constant 0 : i32
    return %c0_i32, %c0_i32_0 : i32, i32
  }
  func.func @transform_3(%arg0: i32) -> (i32, i32) {
    %c0_i32 = arith.constant 0 : i32
    %c0_i32_0 = arith.constant 0 : i32
    %c0_i32_1 = arith.constant 0 : i32
    return %c0_i32, %c0_i32_0 : i32, i32
  }
  func.func @transform_4(%arg0: i32) -> (i32, i32, i32) {
    %c0_i32 = arith.constant 0 : i32
    %c0_i32_0 = arith.constant 0 : i32
    %c0_i32_1 = arith.constant 0 : i32
    return %arg0, %c0_i32, %c0_i32_0 : i32, i32, i32
  }
}

</mosaic_0001>

<bundles_post_ra>
// kernel: tpu_custom_call.1
= control target key start
LH: loop header
LB: loop body
LE: loop exit
PB: predicated region body
PF: predicated region fallthrough
CT: control target
= control target key end

     0   :  { %9 = vsyncpa [#allocation4], 0  ;;  %s1354_s0 = inlined_call_operand.vmem [shape: f32[2,32,18], index: 0, kind: input, shape index: {}]   ;;  %s1355_s1 = inlined_call_operand.vmem [shape: f32[32,96], index: 1, kind: input, shape index: {}]   ;;  %s1356_s2 = inlined_call_operand.vmem [shape: f32[32,96], index: 2, kind: input, shape index: {}]   ;;  %s1357_s3 = inlined_call_operand.vmem [shape: f32[32,8], index: 3, kind: input, shape index: {}]   ;;  %s1358_s4 = inlined_call_operand.hbm [shape: f32[2,1,16], index: 4, kind: output, shape index: {}]  }
   0x1   :  { %11 = vsyncpa [#allocation4 + $0x1], 0  ;;  %s1100_s15 = smov 0   ;;  %s1102_s16 = smov 0  }
   0x2   :  { %s1104_s17 = smov 0   ;;  %s1106_s18 = smov 0  }
   0x3 LB: > { %s1121_s19 = sadd.s32 4294967295, %s1060_s18   ;;  %s813_s20 = sadd.s32 4294967294, %s1060_s18   ;;  %s1060_s18 = sphi %s1106_s18, %s1364_s18   ;;  %s1056_s17 = sphi %s1104_s17, %s1363_s17   ;;  %s1052_s16 = sphi %s1102_s16, %s1362_s16   ;;  %s1048_s15 = sphi %s1100_s15, %s1361_s15  }
   0x4   : > { %s1125_s21 = sadd.s32 1, %s1060_s18   ;;  %s113_s22 = sadd.s32 1, %s1056_s17 }
   0x5   : > { %s110_s23 = ssub.s32 %s1060_s18, %s1125_s21  ;;  %p123_p0 = scmp.ne.s32.totalorder %s1056_s17, %s1052_s16 }
   0x6   : > { %p111_p1 = scmp.eq.s32.totalorder %s110_s23, 0  ;;  %p124_p2 = scmp.eq.s32.totalorder %s1121_s19, 1 }
   0x7   : > { %p129_p3 = scmp.ne.s32.totalorder %s1052_s16, %s1048_s15  ;;  %p130_p4 = scmp.eq.s32.totalorder %s813_s20, 1 }
   0x8   : > { %s1136_s24 = scalar_select %p111_p1, %s1056_s17, %s113_s22  }
   0x9   : > { %p1138_p5 = por %p124_p2, %p123_p0  ;;  %p1142_p6 = por %p130_p4, %p129_p3 }
   0xa   : > { %p816_p7 = scmp.ge.s32.totalorder %s1060_s18, 1  ;;  %p165_p8 = scmp.lt.s32.totalorder %s1060_s18, 3 }
   0xc   : > { %p166_p9 = pnand %p816_p7, %p165_p8 }
   0xd   : > { %p190_p10 = scmp.lt.s32.totalorder (!%p166_p9), %s1121_s19, 1  ;;  %s1062_s6 = smov (!%p166_p9), 126  }
   0xe   : > { %169 = sbr.rel (%p166_p9) target bundleno = 1001 (0x3e9), region = 36  ;;  %s1063_s7 = smov (!%p166_p9), 127  }
   0xf   : > { %s1068_s9 = smov (!%p166_p9), 1   ;;  %s1070_s13 = smov (!%p166_p9), 121  }
  0x10   : > { %s827_s30 = sshll.u32 (!%p166_p9), %s1121_s19, 4 }
  0x11   : > { %s756_s11 = scalar_lea.hbm (!%p166_p9), %s1358_s4, %s827_s30 }
  0x13   : > { %s191_s27 = scalar_select %p190_p10, %s1121_s19, 1  ;;  %v237_v4 = vld [vmem:[%s1355_s1] sm:$0xff]  ;;  %vm261_vm0 = vcmask 785408   ;;  %v1184_v5 = vld [vmem:[%s1357_s3 + $0x8] sm:$0xff]  ;;  %v1064_v7 = vmov 0   ;;  %v1196_v8 = vld [vmem:[%s1357_s3 + $0x10] sm:$0xff] }
  0x14   : > { %887 = vmatprep.mubr.msk.f32.mxu0 %vm261_vm0, %v237_v4  ;;  %v1189_v6 = vld [vmem:[%s1357_s3] sm:$0xff]  ;;  %977 = vset.pattern.permute.xlu1 %v1064_v7  ;;  %v1201_v9 = vld [vmem:[%s1357_s3 + $0x18] sm:$0xff]  ;;  %v1065_v10 = vmov 1   ;;  %v1066_v11 = vmov 2   ;;  %v238_v20 = vld [vmem:[%s1355_s1 + $0x8] sm:$0xff]  ;;  %vm447_vm1 = vcmask 146432  }
  0x15   : > { %s830_s28 = sshll.u32 %s191_s27, 5  ;;  %976 = vset.pattern.permute.xlu0 %v1064_v7  ;;  %v239_v21 = vld [vmem:[%s1355_s1 + $0x10] sm:$0xff]  ;;  %v240_v22 = vld [vmem:[%s1355_s1 + $0x18] sm:$0xff]  ;;  %v1067_v23 = vmov 0.0   ;;  %vm363_vm2 = vcmask 130048   ;;  %vm468_vm3 = vcmask 138248  }
  0x16   : > { %s194_s5 = scalar_lea.vmem %s1354_s0, %s830_s28  ;;  %450 = vst.msk [vmem:[#allocation2 + $0x10] sm:$0xff] %vm447_vm1, %v1067_v23  ;;  %448 = vst.msk [vmem:[#allocation2] sm:$0xff] %vm447_vm1, %v1067_v23  ;;  %s188_s28 = sand.u32 1, %s1052_s16   ;;  %vm743_vm4 = vcmask 122880  }
  0x17   : > { %v1153_v0 = vld [vmem:[%s194_s5 + $0x18] sm:$0xff]  ;;  %v1155_v1 = vld [vmem:[%s194_s5 + $0x8] sm:$0xff]  ;;  %v1161_v2 = vld [vmem:[%s194_s5 + $0x10] sm:$0xff]  ;;  %449 = vst.msk [vmem:[#allocation2 + $0x8] sm:$0xff] %vm447_vm1, %v1067_v23 }
  0x18   : > { %231 = vrot.lane.b32.xlu0 %v1153_v0, %s1062_s6  ;;  %227 = vrot.lane.b32.xlu1 %v1155_v1, %s1062_s6  ;;  %v1163_v3 = vld [vmem:[%s194_s5] sm:$0xff]  ;;  %451 = vst.msk [vmem:[#allocation2 + $0x18] sm:$0xff] %vm447_vm1, %v1067_v23  ;;  %s189_s5 = scalar_lea.vmem [#allocation3], %s188_s28 }
  0x19   : > { %s758_s8 = sshll.u32 %s189_s5, 4  ;;  %s759_s8 = int_to_ptr.vmem [resolvable:$true] %s758_s8 }
  0x1a   : > { %s1000_s12 = scalar_lea.vmem %s759_s8, 16 }
  0x1b   : > { %p1001_p11 = scmp.ne.s32.totalorder %s759_s8, %s1000_s12 }
  0x1c   : > { %229 = vrot.lane.b32.xlu0 %v1161_v2, %s1062_s6  ;;  %225 = vrot.lane.b32.xlu1 %v1163_v3, %s1062_s6 }
  0x1d   : > { %p1002_p12 = pnand %p1001_p11, %p1138_p5 }
  0x1f   : > { %p1003_p13 = pneg %p1002_p12 }
  0x20   : > { %219 = vrot.lane.b32.xlu0 %v1153_v0, %s1063_s7  ;;  %217 = vrot.lane.b32.xlu1 %v1161_v2, %s1063_s7 }
  0x24   : > { %215 = vrot.lane.b32.xlu0 %v1155_v1, %s1063_s7  ;;  %213 = vrot.lane.b32.xlu1 %v1163_v3, %s1063_s7 }
  0x28   : > { %248 = vperm.xlu1 %977, %v1184_v5   ;;  %243 = vperm.xlu0 %976, %v1189_v6  }
  0x2c   : > { %253 = vperm.xlu1 %977, %v1196_v8   ;;  %258 = vperm.xlu0 %976, %v1201_v9  }
  0x30   : > { %978 = vset.pattern.permute.xlu1 %v1065_v10  ;;  %979 = vset.pattern.permute.xlu0 %v1065_v10 }
  0x31   : > { %420 = vperm.xlu1 %978, %v1201_v9   ;;  %416 = vperm.xlu0 %979, %v1196_v8  }
  0x35   : > { %980 = vset.pattern.permute.xlu1 %v1066_v11  ;;  %982 = vset.pattern.permute.xlu0 %v1066_v11 }
  0x36   : > { %440 = vperm.xlu1 %980, %v1201_v9   ;;  %436 = vperm.xlu0 %982, %v1196_v8  }
  0x3a   : > { %981 = vset.pattern.permute.xlu1 %v1065_v10  ;;  %428 = vperm.xlu0 %982, %v1189_v6  }
  0x3b   : > { %412 = vperm.xlu1 %981, %v1184_v5  }
  0x3f   : > { %408 = vperm.xlu1 %981, %v1189_v6  }
  0x43   : > { %983 = vset.pattern.permute.xlu1 %v1066_v11 }
  0x44   : > { %432 = vperm.xlu1 %983, %v1184_v5  }
  0x8a   : > { %v232_v12 = vpop.permute.xlu0 %231  ;;  %v228_v13 = vpop.permute.xlu1 %227 }
  0x8b   : > { %863 = vmatprep.subr.mxu0 %v232_v12 }
  0x8c   : > { %864 = vmatpush3.msra.mxu0 %v232_v12 }
  0x8e   : > { %v230_v14 = vpop.permute.xlu0 %229  ;;  %v226_v15 = vpop.permute.xlu1 %225 }
  0x8f   : > { %865 = vmatprep.subr.mxu0 %v230_v14 }
  0x90   : > { %866 = vmatpush3.msra.mxu0 %v230_v14 }
  0x91   : > { %867 = vmatprep.subr.mxu0 %v228_v13 }
  0x92   : > { %868 = vmatpush3.msra.mxu0 %v228_v13  ;;  %v220_v16 = vpop.permute.xlu0 %219  ;;  %v218_v17 = vpop.permute.xlu1 %217 }
  0x93   : > { %869 = vmatprep.subr.mxu0 %v226_v15 }
  0x94   : > { %870 = vmatpush3.msra.mxu0 %v226_v15 }
  0x95   : > { %871 = vmatprep.subr.mxu0 %v220_v16 }
  0x96   : > { %872 = vmatpush3.msra.mxu0 %v220_v16  ;;  %v216_v18 = vpop.permute.xlu0 %215  ;;  %v214_v19 = vpop.permute.xlu1 %213 }
  0x97   : > { %873 = vmatprep.subr.mxu0 %v218_v17 }
  0x98   : > { %874 = vmatpush3.msra.mxu0 %v218_v17 }
  0x99   : > { %875 = vmatprep.subr.mxu0 %v216_v18 }
  0x9a   : > { %876 = vmatpush3.msra.mxu0 %v216_v18 }
  0x9b   : > { %877 = vmatprep.subr.mxu0 %v214_v19 }
  0x9c   : > { %878 = vmatpush3.msra.mxu0 %v214_v19 }
  0x9d   : > { %879 = vmatprep.subr.mxu0 %v1153_v0 }
  0x9e   : > { %880 = vmatpush3.msra.mxu0 %v1153_v0 }
  0x9f   : > { %881 = vmatprep.subr.mxu0 %v1161_v2 }
  0xa0   : > { %882 = vmatpush3.msra.mxu0 %v1161_v2 }
  0xa1   : > { %883 = vmatprep.subr.mxu0 %v1155_v1 }
  0xa2   : > { %884 = vmatpush3.msra.mxu0 %v1155_v1 }
  0xa3   : > { %885 = vmatprep.subr.mxu0 %v1163_v3  ;;  %v244_v24 = vpop.permute.xlu0 %243  ;;  %v249_v25 = vpop.permute.xlu1 %248 }
  0xa4   : > { %886 = vmatpush3.msra.mxu0 %v1163_v3 }
  0xa5   : > { %888 = vmatmul.mubr.msk.f32.vlgmr.msra.gmra.mxu0 %vm261_vm0, %v238_v20 }
  0xa6   : > { %890 = vmatprep.mubr.msk.f32.mxu0 %vm261_vm0, %v239_v21 }
  0xa7   : > { %v259_v29 = vpop.permute.xlu0 %258  ;;  %v254_v35 = vpop.permute.xlu1 %253 }
  0xa9   : > { %891 = vmatmul.mubr.msk.f32.gmra.mxu0 %vm261_vm0, %v240_v22 }
  0xac   : > { %v421_v15 = vpop.permute.xlu1 %420  ;;  %v417_v20 = vpop.permute.xlu0 %416 }
  0xb1   : > { %v441_v18 = vpop.permute.xlu1 %440  ;;  %v437_v23 = vpop.permute.xlu0 %436 }
  0xb6   : > { %v413_v19 = vpop.permute.xlu1 %412 }
  0xba   : > { %v409_v22 = vpop.permute.xlu1 %408 }
 0x165   : > { %v889_v26 = vpop.f32.mrf.mxu0 }
 0x166   : > { %v346_v27 = vadd.f32 %v889_v26, %v249_v25 }
 0x167   : > { %v340_v28 = vpop.f32.mrf.mxu0 }
 0x168   : > { %v341_v30 = vadd.f32 %v340_v28, %v244_v24  ;;  %v360_v32 = vmax.f32 %v346_v27, 0.0 }
 0x169   : > { %v892_v31 = vpop.f32.mrf.mxu0 }
 0x16a   : > { %v359_v33 = vmax.f32 %v341_v30, 0.0  ;;  %v356_v34 = vadd.f32 %v892_v31, %v259_v29  ;;  %v365_v39 = vsel %vm363_vm2, %v360_v32, 0.0 }
 0x16b   : > { %v350_v36 = vpop.f32.mrf.mxu0 }
 0x16c   : > { %v364_v37 = vsel %vm363_vm2, %v359_v33, 0.0  ;;  %v351_v38 = vadd.f32 %v350_v36, %v254_v35  ;;  %v362_v40 = vmax.f32 %v356_v34, 0.0  ;;  %v429_v34 = vpop.permute.xlu0 %428  ;;  %v433_v35 = vpop.permute.xlu1 %432 }
 0x16d   : > { %v366_v42 = vadd.f32 %v365_v39, %v364_v37 }
 0x16e   : > { %v361_v41 = vmax.f32 %v351_v38, 0.0  ;;  %v369_v45 = vsel %vm363_vm2, %v362_v40, 0.0 }
 0x170   : > { %v367_v43 = vsel %vm363_vm2, %v361_v41, 0.0 }
 0x171   : > { %v368_v44 = vadd.f32 %v367_v43, %v366_v42 }
 0x173   : > { %v370_v46 = vadd.f32 %v369_v45, %v368_v44 }
 0x175   : > { %v371_v47 = vrot.slane %v370_v46, 4 }
 0x177   : > { %v372_v48 = vadd.f32 %v371_v47, %v370_v46  ;;  %v505_v46 = vld [vmem:[%s1356_s2] sm:$0xff]  ;;  %v1069_v47 = vmov 3  }
 0x178   : > { %917 = vmatprep.mubr.msk.f32.mxu1 %vm261_vm0, %v505_v46  ;;  %984 = vset.pattern.permute.xlu1 %v1069_v47 }
 0x179   : > { %v373_v49 = vrot.slane %v372_v48, 2  ;;  %985 = vset.pattern.permute.xlu0 %v1069_v47 }
 0x17b   : > { %v374_v50 = vadd.f32 %v373_v49, %v372_v48  ;;  %v203_v48 = vld [vmem:[%s1357_s3] sm:$0x1]  ;;  %v1071_v49 = vmov 4  }
 0x17d   : > { %v375_v51 = vrot.slane %v374_v50, 1 }
 0x17f   : > { %v376_v52 = vadd.f32 %v375_v51, %v374_v50  ;;  %v1072_v50 = vmov 5   ;;  %v1073_v51 = vmov 6  }
 0x181   : > { %v378_v53 = vmul.f32 0.03125, %v376_v52 }
 0x183   : > { %v379_v54 = vsub.f32 %v359_v33, %v378_v53  ;;  %v380_v55 = vsub.f32 %v360_v32, %v378_v53  ;;  %v381_v56 = vsub.f32 %v361_v41, %v378_v53  ;;  %v382_v57 = vsub.f32 %v362_v40, %v378_v53 }
 0x185   : > { %v383_v58 = vmul.f32 %v379_v54, %v379_v54  ;;  %v384_v59 = vmul.f32 %v380_v55, %v380_v55  ;;  %v385_v60 = vmul.f32 %v381_v56, %v381_v56  ;;  %v386_v63 = vmul.f32 %v382_v57, %v382_v57 }
 0x187   : > { %v387_v61 = vsel %vm363_vm2, %v383_v58, 0.0  ;;  %v388_v62 = vsel %vm363_vm2, %v384_v59, 0.0  ;;  %v390_v1 = vsel %vm363_vm2, %v385_v60, 0.0  ;;  %v392_v3 = vsel %vm363_vm2, %v386_v63, 0.0  ;;  %v508_v58 = vld [vmem:[%s1356_s2 + $0x18] sm:$0xff] }
 0x188   : > { %v389_v0 = vadd.f32 %v388_v62, %v387_v61 }
 0x18a   : > { %v391_v2 = vadd.f32 %v390_v1, %v389_v0 }
 0x18c   : > { %v393_v4 = vadd.f32 %v392_v3, %v391_v2 }
 0x18e   : > { %v394_v7 = vrot.slane %v393_v4, 4 }
 0x190   : > { %v395_v10 = vadd.f32 %v394_v7, %v393_v4 }
 0x192   : > { %v396_v11 = vrot.slane %v395_v10, 2 }
 0x194   : > { %v397_v12 = vadd.f32 %v396_v11, %v395_v10 }
 0x196   : > { %v398_v13 = vrot.slane %v397_v12, 1 }
 0x198   : > { %v399_v14 = vadd.f32 %v398_v13, %v397_v12 }
 0x19a   : > { %v400_v16 = vmul.f32 0.03125, %v399_v14 }
 0x19c   : > { %v401_v17 = vadd.f32 1e-05, %v400_v16 }
 0x19e   : > { %996 = vrsqrt.f32 %v401_v17 }
 0x1ab   : > { %v997_v21 = vpop.eup %996 }
 0x1ac   : > { %v406_v24 = vmul.f32 %v997_v21, %v382_v57  ;;  %v404_v25 = vmul.f32 %v997_v21, %v380_v55  ;;  %v405_v26 = vmul.f32 %v997_v21, %v381_v56  ;;  %v403_v27 = vmul.f32 %v997_v21, %v379_v54  ;;  %v506_v56 = vld [vmem:[%s1356_s2 + $0x8] sm:$0xff]  ;;  %v507_v57 = vld [vmem:[%s1356_s2 + $0x10] sm:$0xff] }
 0x1ae   : > { %v426_v28 = vmul.f32 %v421_v15, %v406_v24  ;;  %v425_v29 = vmul.f32 %v417_v20, %v405_v26  ;;  %v424_v31 = vmul.f32 %v413_v19, %v404_v25  ;;  %v423_v32 = vmul.f32 %v409_v22, %v403_v27 }
 0x1b0   : > { %v446_v30 = vadd.f32 %v441_v18, %v426_v28  ;;  %v445_v33 = vadd.f32 %v437_v23, %v425_v29  ;;  %v443_v36 = vadd.f32 %v429_v34, %v423_v32  ;;  %v444_v37 = vadd.f32 %v433_v35, %v424_v31 }
 0x1b2   : > { %460 = vrot.lane.b32.xlu0 %v445_v33, %s1068_s9  ;;  %462 = vrot.lane.b32.xlu1 %v446_v30, %s1068_s9 }
 0x1b6   : > { %456 = vrot.lane.b32.xlu0 %v443_v36, %s1068_s9  ;;  %458 = vrot.lane.b32.xlu1 %v444_v37, %s1068_s9 }
 0x224   : > { %v461_v38 = vpop.permute.xlu0 %460  ;;  %v463_v39 = vpop.permute.xlu1 %462 }
 0x225   : > { %471 = vst.msk [vmem:[#allocation2 + $0x10] sm:$0xff] %vm468_vm3, %v461_v38  ;;  %472 = vst.msk [vmem:[#allocation2 + $0x18] sm:$0xff] %vm468_vm3, %v463_v39 }
 0x228   : > { %v457_v40 = vpop.permute.xlu0 %456  ;;  %v459_v41 = vpop.permute.xlu1 %458 }
 0x229   : > { %469 = vst.msk [vmem:[#allocation2] sm:$0xff] %vm468_vm3, %v457_v40  ;;  %470 = vst.msk [vmem:[#allocation2 + $0x8] sm:$0xff] %vm468_vm3, %v459_v41 }
 0x22c   : > { %v1241_v42 = vld [vmem:[#allocation2 + $0x10] sm:$0xff]  ;;  %v1243_v43 = vld [vmem:[#allocation2 + $0x18] sm:$0xff] }
 0x22d   : > { %497 = vrot.lane.b32.xlu0 %v1241_v42, %s1062_s6  ;;  %499 = vrot.lane.b32.xlu1 %v1243_v43, %s1062_s6 }
 0x230   : > { %v1249_v44 = vld [vmem:[#allocation2] sm:$0xff]  ;;  %v1251_v45 = vld [vmem:[#allocation2 + $0x8] sm:$0xff] }
 0x231   : > { %493 = vrot.lane.b32.xlu0 %v1249_v44, %s1062_s6  ;;  %495 = vrot.lane.b32.xlu1 %v1251_v45, %s1062_s6  ;;  %s746_s6 = scalar_lea.sflag [#allocation4], %s188_s28 }
 0x235   : > { %485 = vrot.lane.b32.xlu0 %v1241_v42, %s1063_s7  ;;  %487 = vrot.lane.b32.xlu1 %v1243_v43, %s1063_s7 }
 0x239   : > { %481 = vrot.lane.b32.xlu0 %v1249_v44, %s1063_s7  ;;  %483 = vrot.lane.b32.xlu1 %v1251_v45, %s1063_s7 }
 0x23d   : > { %510 = vperm.xlu1 %984, %v1189_v6   ;;  %514 = vperm.xlu0 %985, %v1184_v5  }
 0x241   : > { %518 = vperm.xlu1 %984, %v1196_v8   ;;  %205 = vrot.lane.b32.xlu0 %v203_v48, %s1070_s13  ;;  %s1074_s13 = smov [#allocation3]  }
 0x242   : > { %987 = vset.pattern.permute.xlu0 %v1071_v49  ;;  %s1004_s7 = sshll.u32 %s1074_s13, 4  ;;  %s1005_s7 = int_to_ptr.vmem [resolvable:$false] %s1004_s7 }
 0x243   : > { %s1006_s19 = scalar_lea.vmem %s1005_s7, 32  ;;  %p1007_p0 = scmp.lt.s32.totalorder %s759_s8, %s1005_s7 }
 0x244   : > { %p1008_p1 = scmp.lt.s32.totalorder %s1006_s19, %s1000_s12 }
 0x245   : > { %522 = vperm.xlu1 %984, %v1201_v9   ;;  %673 = vperm.xlu0 %987, %v1184_v5  }
 0x246   : > { %p1009_p2 = por %p1008_p1, %p1007_p0 }
 0x248   : > { %p1010_p3 = pnand %p1009_p2, %p1003_p13 }
 0x249   : > { %986 = vset.pattern.permute.xlu1 %v1071_v49  ;;  %989 = vset.pattern.permute.xlu0 %v1072_v50 }
 0x24a   : > { %669 = vperm.xlu1 %986, %v1189_v6   ;;  %693 = vperm.xlu0 %989, %v1184_v5  }
 0x24e   : > { %677 = vperm.xlu1 %986, %v1196_v8   ;;  %992 = vset.pattern.permute.xlu0 %v1073_v51 }
 0x24f   : > { %709 = vperm.xlu0 %992, %v1189_v6  }
 0x252   : > { %988 = vset.pattern.permute.xlu1 %v1072_v50 }
 0x253   : > { %689 = vperm.xlu1 %988, %v1189_v6   ;;  %717 = vperm.xlu0 %992, %v1196_v8  }
 0x257   : > { %990 = vset.pattern.permute.xlu1 %v1071_v49 }
 0x258   : > { %681 = vperm.xlu1 %990, %v1201_v9  }
 0x25c   : > { %991 = vset.pattern.permute.xlu1 %v1072_v50 }
 0x25d   : > { %697 = vperm.xlu1 %991, %v1196_v8  }
 0x261   : > { %993 = vset.pattern.permute.xlu1 %v1073_v51 }
 0x262   : > { %713 = vperm.xlu1 %993, %v1184_v5  }
 0x266   : > { %994 = vset.pattern.permute.xlu1 %v1072_v50 }
 0x267   : > { %701 = vperm.xlu1 %994, %v1201_v9  }
 0x26b   : > { %995 = vset.pattern.permute.xlu1 %v1073_v51 }
 0x26c   : > { %721 = vperm.xlu1 %995, %v1201_v9  }
 0x29f   : > { %v498_v52 = vpop.permute.xlu0 %497  ;;  %v500_v53 = vpop.permute.xlu1 %499 }
 0x2a0   : > { %893 = vmatprep.subr.mxu1 %v500_v53 }
 0x2a1   : > { %894 = vmatpush3.msra.mxu1 %v500_v53 }
 0x2a2   : > { %895 = vmatprep.subr.mxu1 %v498_v52 }
 0x2a3   : > { %v494_v6 = vpop.permute.xlu0 %493  ;;  %896 = vmatpush3.msra.mxu1 %v498_v52  ;;  %v496_v54 = vpop.permute.xlu1 %495 }
 0x2a4   : > { %897 = vmatprep.subr.mxu1 %v496_v54 }
 0x2a5   : > { %898 = vmatpush3.msra.mxu1 %v496_v54 }
 0x2a6   : > { %899 = vmatprep.subr.mxu1 %v494_v6 }
 0x2a7   : > { %v486_v8 = vpop.permute.xlu0 %485  ;;  %900 = vmatpush3.msra.mxu1 %v494_v6  ;;  %v488_v5 = vpop.permute.xlu1 %487 }
 0x2a8   : > { %901 = vmatprep.subr.mxu1 %v488_v5 }
 0x2a9   : > { %902 = vmatpush3.msra.mxu1 %v488_v5 }
 0x2aa   : > { %903 = vmatprep.subr.mxu1 %v486_v8 }
 0x2ab   : > { %904 = vmatpush3.msra.mxu1 %v486_v8  ;;  %v484_v55 = vpop.permute.xlu1 %483  ;;  %v482_v9 = vpop.permute.xlu0 %481 }
 0x2ac   : > { %905 = vmatprep.subr.mxu1 %v484_v55 }
 0x2ad   : > { %906 = vmatpush3.msra.mxu1 %v484_v55 }
 0x2ae   : > { %907 = vmatprep.subr.mxu1 %v482_v9 }
 0x2af   : > { %908 = vmatpush3.msra.mxu1 %v482_v9 }
 0x2b0   : > { %909 = vmatprep.subr.mxu1 %v1243_v43 }
 0x2b1   : > { %910 = vmatpush3.msra.mxu1 %v1243_v43 }
 0x2b2   : > { %911 = vmatprep.subr.mxu1 %v1241_v42 }
 0x2b3   : > { %912 = vmatpush3.msra.mxu1 %v1241_v42 }
 0x2b4   : > { %913 = vmatprep.subr.mxu1 %v1251_v45 }
 0x2b5   : > { %914 = vmatpush3.msra.mxu1 %v1251_v45 }
 0x2b6   : > { %915 = vmatprep.subr.mxu1 %v1249_v44 }
 0x2b7   : > { %916 = vmatpush3.msra.mxu1 %v1249_v44 }
 0x2b8   : > { %918 = vmatmul.mubr.msk.f32.vlgmr.msra.gmra.mxu1 %vm261_vm0, %v506_v56  ;;  %v515_v59 = vpop.permute.xlu0 %514  ;;  %v511_v61 = vpop.permute.xlu1 %510 }
 0x2b9   : > { %920 = vmatprep.mubr.msk.f32.mxu1 %vm261_vm0, %v507_v57 }
 0x2bc   : > { %921 = vmatmul.mubr.msk.f32.gmra.mxu1 %vm261_vm0, %v508_v58  ;;  %v206_v60 = vpop.permute.xlu0 %205  ;;  %v519_v62 = vpop.permute.xlu1 %518 }
 0x2bd   : > { %923 = vpush %v206_v60 }
 0x2c0   : > { %v523_v3 = vpop.permute.xlu1 %522  ;;  %v674_v5 = vpop.permute.xlu0 %673 }
 0x2c5   : > { %v670_v42 = vpop.permute.xlu1 %669  ;;  %v694_v9 = vpop.permute.xlu0 %693 }
 0x2c9   : > { %v678_v47 = vpop.permute.xlu1 %677 }
 0x2ca   : > { %v710_v58 = vpop.permute.xlu0 %709 }
 0x2ce   : > { %v690_v50 = vpop.permute.xlu1 %689 }
 0x2d3   : > { %v682_v6 = vpop.permute.xlu1 %681 }
 0x2d8   : > { %v698_v55 = vpop.permute.xlu1 %697 }
 0x2dd   : > { %v714_v56 = vpop.permute.xlu1 %713 }
 0x2ee   : > { %s924_s29 = spop %923 }
 0x378   : > { %v919_v63 = vpop.f32.mrf.mxu1 }
 0x379   : > { %v609_v0 = vadd.f32 %v919_v63, %v515_v59  ;;  %v702_v59 = vpop.permute.xlu1 %701 }
 0x37a   : > { %v603_v1 = vpop.f32.mrf.mxu1 }
 0x37b   : > { %v604_v2 = vadd.f32 %v603_v1, %v511_v61  ;;  %v623_v7 = vmax.f32 %v609_v0, 0.0 }
 0x37c   : > { %v922_v4 = vpop.f32.mrf.mxu1 }
 0x37d   : > { %v622_v10 = vmax.f32 %v604_v2, 0.0  ;;  %v619_v11 = vadd.f32 %v922_v4, %v523_v3  ;;  %v627_v15 = vsel %vm363_vm2, %v623_v7, 0.0 }
 0x37e   : > { %v613_v12 = vpop.f32.mrf.mxu1 }
 0x37f   : > { %v626_v13 = vsel %vm363_vm2, %v622_v10, 0.0  ;;  %v614_v14 = vadd.f32 %v613_v12, %v519_v62  ;;  %v625_v16 = vmax.f32 %v619_v11, 0.0  ;;  %v718_v12 = vpop.permute.xlu0 %717 }
 0x380   : > { %v628_v18 = vadd.f32 %v627_v15, %v626_v13  ;;  %v722_v13 = vpop.permute.xlu1 %721 }
 0x381   : > { %v624_v17 = vmax.f32 %v614_v14, 0.0  ;;  %v631_v21 = vsel %vm363_vm2, %v625_v16, 0.0 }
 0x383   : > { %v629_v19 = vsel %vm363_vm2, %v624_v17, 0.0 }
 0x384   : > { %v630_v20 = vadd.f32 %v629_v19, %v628_v18 }
 0x386   : > { %v632_v22 = vadd.f32 %v631_v21, %v630_v20 }
 0x388   : > { %v633_v23 = vrot.slane %v632_v22, 4 }
 0x38a   : > { %v634_v24 = vadd.f32 %v633_v23, %v632_v22 }
 0x38c   : > { %v635_v25 = vrot.slane %v634_v24, 2 }
 0x38e   : > { %v636_v26 = vadd.f32 %v635_v25, %v634_v24 }
 0x390   : > { %v637_v27 = vrot.slane %v636_v26, 1 }
 0x392   : > { %v638_v28 = vadd.f32 %v637_v27, %v636_v26 }
 0x394   : > { %v639_v29 = vmul.f32 0.03125, %v638_v28 }
 0x396   : > { %v642_v30 = vsub.f32 %v624_v17, %v639_v29  ;;  %v643_v31 = vsub.f32 %v625_v16, %v639_v29  ;;  %v640_v32 = vsub.f32 %v622_v10, %v639_v29  ;;  %v641_v33 = vsub.f32 %v623_v7, %v639_v29 }
 0x398   : > { %v646_v34 = vmul.f32 %v642_v30, %v642_v30  ;;  %v644_v35 = vmul.f32 %v640_v32, %v640_v32  ;;  %v645_v36 = vmul.f32 %v641_v33, %v641_v33  ;;  %v647_v37 = vmul.f32 %v643_v31, %v643_v31 }
 0x39a   : > { %v648_v38 = vsel %vm363_vm2, %v644_v35, 0.0  ;;  %v649_v39 = vsel %vm363_vm2, %v645_v36, 0.0  ;;  %v651_v41 = vsel %vm363_vm2, %v646_v34, 0.0  ;;  %v653_v44 = vsel %vm363_vm2, %v647_v37, 0.0 }
 0x39b   : > { %v650_v40 = vadd.f32 %v649_v39, %v648_v38 }
 0x39d   : > { %v652_v43 = vadd.f32 %v651_v41, %v650_v40 }
 0x39f   : > { %v654_v45 = vadd.f32 %v653_v44, %v652_v43 }
 0x3a1   : > { %v655_v46 = vrot.slane %v654_v45, 4 }
 0x3a3   : > { %v656_v48 = vadd.f32 %v655_v46, %v654_v45 }
 0x3a5   : > { %v657_v49 = vrot.slane %v656_v48, 2 }
 0x3a7   : > { %v658_v51 = vadd.f32 %v657_v49, %v656_v48 }
 0x3a9   : > { %v659_v52 = vrot.slane %v658_v51, 1 }
 0x3ab   : > { %v660_v53 = vadd.f32 %v659_v52, %v658_v51 }
 0x3ad   : > { %v661_v54 = vmul.f32 0.03125, %v660_v53 }
 0x3af   : > { %v662_v8 = vadd.f32 1e-05, %v661_v54 }
 0x3b1   : > { %998 = vrsqrt.f32 %v662_v8 }
 0x3be   : > { %v999_v57 = vpop.eup %998 }
 0x3bf   : > { %v664_v60 = vmul.f32 %v999_v57, %v640_v32  ;;  %v666_v61 = vmul.f32 %v999_v57, %v642_v30  ;;  %v667_v62 = vmul.f32 %v999_v57, %v643_v31  ;;  %v665_v63 = vmul.f32 %v999_v57, %v641_v33 }
 0x3c0   : > { %v741_v30 = vstv %s924_s29 }
 0x3c1   : > { %v684_v0 = vmul.f32 %v670_v42, %v664_v60  ;;  %v686_v1 = vmul.f32 %v678_v47, %v666_v61  ;;  %v687_v2 = vmul.f32 %v682_v6, %v667_v62  ;;  %v685_v3 = vmul.f32 %v674_v5, %v665_v63 }
 0x3c3   : > { %v704_v4 = vadd.f32 %v690_v50, %v684_v0  ;;  %v706_v7 = vadd.f32 %v698_v55, %v686_v1  ;;  %v705_v10 = vadd.f32 %v694_v9, %v685_v3  ;;  %v707_v11 = vadd.f32 %v702_v59, %v687_v2 }
 0x3c5   : > { %v725_v14 = vmul.f32 %v714_v56, %v705_v10  ;;  %v724_v15 = vmul.f32 %v710_v58, %v704_v4  ;;  %v726_v16 = vmul.f32 %v718_v12, %v706_v7  ;;  %v727_v19 = vmul.f32 %v722_v13, %v707_v11 }
 0x3c7   : > { %v729_v17 = vsel %vm363_vm2, %v725_v14, 0.0  ;;  %v728_v18 = vsel %vm363_vm2, %v724_v15, 0.0  ;;  %v731_v21 = vsel %vm363_vm2, %v726_v16, 0.0  ;;  %v733_v23 = vsel %vm363_vm2, %v727_v19, 0.0 }
 0x3c8   : > { %v730_v20 = vadd.f32 %v729_v17, %v728_v18 }
 0x3ca   : > { %v732_v22 = vadd.f32 %v731_v21, %v730_v20 }
 0x3cc   : > { %v734_v24 = vadd.f32 %v733_v23, %v732_v22 }
 0x3ce   : > { %v735_v25 = vrot.slane %v734_v24, 4 }
 0x3d0   : > { %v736_v26 = vadd.f32 %v735_v25, %v734_v24 }
 0x3d2   : > { %v737_v27 = vrot.slane %v736_v26, 2 }
 0x3d4   : > { %v738_v28 = vadd.f32 %v737_v27, %v736_v26 }
 0x3d6   : > { %v739_v29 = vrot.slane %v738_v28, 1 }
 0x3d8   : > { %v740_v31 = vadd.f32 %v739_v29, %v738_v28 }
 0x3da   : > { %v742_v32 = vadd.f32 %v741_v30, %v740_v31 }
 0x3dc   : > { %744 = vst.msk [vmem:[%s189_s5] sm:$0x1] %vm743_vm4, %v742_v32 }
 0x3dd   : > { %1013 = shalt.err (!%p1010_p3)
}
 0x3de   : > { %s1014_s14 = scalar_lea.hbm %s756_s11, 16  ;;  %s1018_s23 = scalar_lea.hbm %s1358_s4, 32 }
 0x3df   : > { %p1015_p4 = scmp.ne.s32.totalorder %s756_s11, %s1014_s14  ;;  %p1019_p9 = scmp.lt.s32.totalorder %s756_s11, %s1358_s4 }
 0x3e0   : > { %p1020_p10 = scmp.lt.s32.totalorder %s1018_s23, %s1014_s14 }
 0x3e1   : > { %p1016_p7 = pnand %p1015_p4, %p1138_p5 }
 0x3e2   : > { %p1021_p11 = por %p1020_p10, %p1019_p9 }
 0x3e3   : > { %p1017_p8 = pneg %p1016_p7 }
 0x3e5   : > { %p1022_p12 = pnand %p1021_p11, %p1017_p8 }
 0x3e7   : > { %1025 = shalt.err (!%p1022_p12)
}
 0x3e8   : > { %925 = dma.vmem_to_hbm [thread:$0]  (%p1138_p5), %s759_s8, 16, %s756_s11, %s746_s6  }
 0x3e9 PF: > { %p931_p13 = scmp.ge.s32.totalorder %s1060_s18, 2  ;;  %s770_s29 = sand.u32 1, %s1048_s15  }
 0x3ea   : > { %s771_s30 = scalar_lea.sflag [#allocation4], %s770_s29 }
 0x3eb   : > { %p928_p0 = pnand %p931_p13, %p1142_p6 }
 0x3ed   : > { %p929_p1 = pneg %p928_p0 }
 0x3ef   : > { %1043 = dma.done.wait (%p929_p1), %s771_s30, 16  }
 0x3f0   : > { %1045 = vsyncadd (%p929_p1), %s771_s30, 4294967280  ;;  %p14_p2 = scmp.ge.s32.totalorder %s1125_s21, 4   ;;  %s1361_s15 = smov %s1052_s16 }
 0x3f1   : > { %s1362_s16 = smov %s1056_s17  ;;  %s1363_s17 = smov %s1136_s24 }
 0x3f2   : > { %s1364_s18 = smov %s1125_s21  ;;  %16 = sbr.rel (!%p14_p2) target bundleno = 3 (0x3), region = 71 }
 0x3f7   :  { %775 = vsyncpa [#allocation4], 1 }
 0x3f8   :  { %777 = vsyncpa [#allocation4 + $0x1], 1 }

</bundles_post_ra>
